<compile_context>
chip_gen: v7x
topology: tpu7x:2x2x1
jax: 0.10.0
libtpu: 0.0.40
codegen_flags: <defaults>
</compile_context>

<pallas_src>
import jax
import jax.numpy as jnp
from jax.experimental import pallas as pl
from jax.experimental.pallas import tpu as pltpu


def _round_up(x, m):
    return ((x + m - 1) // m) * m


def _plan_batch_tiling(B, tile_b):
    """Pick (tile_rows, num_steps).

    - tile rows are a multiple of 8 (sublane alignment) unless a single block
      covers the whole batch (block dim == full array dim is always legal);
    - when B is large, force an even number of balanced steps so v7x's two
      TensorCores both get work under dimension_semantics=("parallel",);
    - the last block may be ragged; Pallas masks out-of-bounds reads/writes,
      so no batch padding pass over HBM is required.
    """
    min_split = 256  # only split across TCs if each gets a decent chunk
    steps = pl.cdiv(B, tile_b)
    if steps == 1:
        if B < 2 * min_split:
            return B, 1
        steps = 2
    if steps % 2 == 1 and B >= 2 * min_split:
        steps += 1
    tile = _round_up(pl.cdiv(B, steps), 8)
    grid = pl.cdiv(B, tile)
    return tile, grid


def _mlp_kernel(x_ref, w1_ref, b1_ref, w2_ref, b2_ref, w3_ref, b3_ref, o_ref):
    # Fused 3-layer MLP on one batch tile. Weights/biases are VMEM-resident
    # across grid steps; only x and y move per step.
    #
    # The (optional) f32->bf16 cast of x happens here, on-chip: a VPU cast is
    # free relative to HBM traffic and avoids a wrapper-side pass over x.
    x = x_ref[...].astype(w1_ref.dtype)
    h = jnp.tanh(
        jnp.dot(x, w1_ref[...], preferred_element_type=jnp.float32) + b1_ref[...]
    )
    h = jnp.tanh(
        jnp.dot(h.astype(w2_ref.dtype), w2_ref[...],
                preferred_element_type=jnp.float32) + b2_ref[...]
    )
    y = jnp.dot(h.astype(w3_ref.dtype), w3_ref[...],
                preferred_element_type=jnp.float32) + b3_ref[...]
    o_ref[...] = y.astype(o_ref.dtype)


def robotics_mlp_forward(x, params, *, tile_b=2048, use_bf16=False):
    """x: [B, input_size] float32 (or bf16). params: dict of (w1,b1,w2,b2,w3,b3)
    with weights stored as [in_features, out_features], biases as [1, out_features].

    Returns [B, output_size]; dtype is bf16 when use_bf16=True, else x.dtype.
    """
    w1, b1 = params["w1"], params["b1"]
    w2, b2 = params["w2"], params["b2"]
    w3, b3 = params["w3"], params["b3"]

    B, K = x.shape
    H1 = w1.shape[1]
    H2 = w2.shape[1]
    N = w3.shape[1]

    tile, grid_steps = _plan_batch_tiling(B, tile_b)

    # Only the tiny, VMEM-resident weights get converted in the wrapper
    # (~55 KiB total; negligible). x / y are never copied in HBM.
    mm_dtype = jnp.bfloat16 if use_bf16 else jnp.float32
    out_dtype = jnp.bfloat16 if use_bf16 else x.dtype
    w1_c = w1.astype(mm_dtype)
    w2_c = w2.astype(mm_dtype)
    w3_c = w3.astype(mm_dtype)
    # biases stay f32: bias-add + tanh are kept in f32 everywhere (safe on v5e).
    b1_c = b1.astype(jnp.float32)
    b2_c = b2.astype(jnp.float32)
    b3_c = b3.astype(jnp.float32)

    flops = 2 * B * (K * H1 + H1 * H2 + H2 * N)
    transcendentals = B * (H1 + H2)
    bytes_accessed = (
        x.size * x.dtype.itemsize
        + B * N * jnp.dtype(out_dtype).itemsize
        + sum(a.size * a.dtype.itemsize
              for a in (w1_c, b1_c, w2_c, b2_c, w3_c, b3_c))
    )

    y = pl.pallas_call(
        _mlp_kernel,
        out_shape=jax.ShapeDtypeStruct((B, N), out_dtype),
        grid_spec=pltpu.PrefetchScalarGridSpec(
            num_scalar_prefetch=0,
            grid=(grid_steps,),
            in_specs=[
                pl.BlockSpec((tile, K), lambda i: (i, 0)),   # x: streamed
                pl.BlockSpec((K, H1), lambda i: (0, 0)),     # W1: resident
                pl.BlockSpec((1, H1), lambda i: (0, 0)),     # b1: resident
                pl.BlockSpec((H1, H2), lambda i: (0, 0)),    # W2: resident
                pl.BlockSpec((1, H2), lambda i: (0, 0)),     # b2: resident
                pl.BlockSpec((H2, N), lambda i: (0, 0)),     # W3: resident
                pl.BlockSpec((1, N), lambda i: (0, 0)),      # b3: resident
            ],
            out_specs=pl.BlockSpec((tile, N), lambda i: (i, 0)),
        ),
        compiler_params=pltpu.CompilerParams(
            dimension_semantics=("parallel",),   # v7x: shard batch tiles over 2 TCs
        ),
        cost_estimate=pl.CostEstimate(
            flops=flops,
            transcendentals=transcendentals,
            bytes_accessed=bytes_accessed,
        ),
    )(x, w1_c, b1_c, w2_c, b2_c, w3_c, b3_c)

    return y


def _orthogonal(key, shape, gain):
    """Deterministic orthogonal init (mirrors RoboticsLinear's orthogonal init)."""
    rows, cols = shape
    a = jax.random.normal(key, (max(rows, cols), min(rows, cols)), jnp.float32)
    q, r = jnp.linalg.qr(a)
    q = q * jnp.sign(jnp.diagonal(r))  # deterministic sign convention
    if rows < cols:
        q = q.T
    return gain * q[:rows, :cols]


def init_params(key, input_size, output_size, layer_sizes):
    sizes = [input_size] + list(layer_sizes) + [output_size]
    params = {}
    gain = float(jnp.sqrt(2.0))  # RoboticsLinear default gain
    for i, (fan_in, fan_out) in enumerate(zip(sizes[:-1], sizes[1:]), start=1):
        key, kw = jax.random.split(key)
        # stored as [in, out] (transposed relative to torch's [out, in])
        w = _orthogonal(kw, (fan_out, fan_in), gain).T
        params[f"w{i}"] = w.astype(jnp.float32)
        params[f"b{i}"] = jnp.zeros((1, fan_out), jnp.float32)
    return params


def reference_forward(x, params):
    h = jnp.tanh(x @ params["w1"] + params["b1"])
    h = jnp.tanh(h @ params["w2"] + params["b2"])
    return h @ params["w3"] + params["b3"]


if __name__ == "__main__":
    input_size, output_size = 23, 34
    layer_sizes = [64, 64]  # module default
    batch = 8

    key = jax.random.PRNGKey(0)
    kx, kp = jax.random.split(key)
    x = jax.random.normal(kx, (batch, input_size), jnp.float32)
    params = init_params(kp, input_size, output_size, layer_sizes)

    # Small-batch f32 path (single grid step, block == full batch).
    y = jax.block_until_ready(robotics_mlp_forward(x, params))
    y_ref = reference_forward(x, params)
    assert y.shape == (batch, output_size)
    assert jnp.allclose(y, y_ref, atol=1e-4, rtol=1e-4), "f32 mismatch vs reference"

    # Larger, awkward batch: exercises balanced multi-step tiling with a
    # ragged (masked) last block — no HBM-side batch padding.
    x_big = jax.random.normal(jax.random.PRNGKey(1), (1037, input_size), jnp.float32)
    y_big = jax.block_until_ready(robotics_mlp_forward(x_big, params))
    y_big_ref = reference_forward(x_big, params)
    assert y_big.shape == (1037, output_size)
    assert jnp.allclose(y_big, y_big_ref, atol=1e-4, rtol=1e-4), "tiled f32 mismatch"

    # Small tile_b: forces an even number (>=2) of steps and a ragged edge.
    y_small_tile = jax.block_until_ready(
        robotics_mlp_forward(x_big, params, tile_b=256)
    )
    assert jnp.allclose(y_small_tile, y_big_ref, atol=1e-4, rtol=1e-4), \
        "ragged-edge f32 mismatch"

    # bf16 streaming path (in-kernel cast of x, bf16 MXU operands, bf16 output;
    # f32 accumulation / bias / tanh) — only quantization-level error expected.
    y_bf16 = jax.block_until_ready(
        robotics_mlp_forward(x_big, params, use_bf16=True)
    )
    assert y_bf16.dtype == jnp.bfloat16
    assert jnp.allclose(y_bf16.astype(jnp.float32), y_big_ref,
                        atol=1e-1, rtol=1e-1), "bf16 mismatch"

    print("KERNEL_OK")
</pallas_src>

<mosaic_0001>
module attributes {stable_mosaic.version = 11 : i64} {
  func.func @_mlp_kernel(%arg0: i32, %arg1: memref<8x23xf32, #tpu.memory_space<vmem>>, %arg2: memref<23x64xf32, #tpu.memory_space<vmem>>, %arg3: memref<1x64xf32, #tpu.memory_space<vmem>>, %arg4: memref<64x64xf32, #tpu.memory_space<vmem>>, %arg5: memref<1x64xf32, #tpu.memory_space<vmem>>, %arg6: memref<64x34xf32, #tpu.memory_space<vmem>>, %arg7: memref<1x34xf32, #tpu.memory_space<vmem>>, %arg8: memref<8x34xf32, #tpu.memory_space<vmem>>) attributes {dimension_semantics = [#tpu.dimension_semantics<parallel>], iteration_bounds = array<i64: 1>, scalar_prefetch = 0 : i64, scratch_operands = 0 : i64, tpu.core_type = #tpu.core_type<tc>, window_params = [{transform_indices = @transform_0, window_bounds = array<i64: 8, 23>}, {pipeline_mode = #tpu.pipeline_mode<synchronous>, transform_indices = @transform_1, window_bounds = array<i64: 23, 64>}, {pipeline_mode = #tpu.pipeline_mode<synchronous>, transform_indices = @transform_2, window_bounds = array<i64: 1, 64>}, {pipeline_mode = #tpu.pipeline_mode<synchronous>, transform_indices = @transform_3, window_bounds = array<i64: 64, 64>}, {pipeline_mode = #tpu.pipeline_mode<synchronous>, transform_indices = @transform_4, window_bounds = array<i64: 1, 64>}, {pipeline_mode = #tpu.pipeline_mode<synchronous>, transform_indices = @transform_5, window_bounds = array<i64: 64, 34>}, {pipeline_mode = #tpu.pipeline_mode<synchronous>, transform_indices = @transform_6, window_bounds = array<i64: 1, 34>}, {transform_indices = @transform_7, window_bounds = array<i64: 8, 34>}]} {
    %c0 = arith.constant 0 : index
    %c0_0 = arith.constant 0 : index
    %0 = vector.load %arg1[%c0, %c0_0] : memref<8x23xf32, #tpu.memory_space<vmem>>, vector<8x23xf32>
    %c0_1 = arith.constant 0 : index
    %c0_2 = arith.constant 0 : index
    %1 = vector.load %arg2[%c0_1, %c0_2] : memref<23x64xf32, #tpu.memory_space<vmem>>, vector<23x64xf32>
    %cst = arith.constant dense<0.000000e+00> : vector<8x64xf32>
    %2 = tpu.matmul %0, %1, %cst {dimension_numbers = #tpu.dot_dimension_numbers<[1], [0], [0], [1], [0, 0, 1, 1], [], []>} : vector<8x23xf32>, vector<23x64xf32>, vector<8x64xf32> -> vector<8x64xf32>
    %c0_3 = arith.constant 0 : index
    %c0_4 = arith.constant 0 : index
    %3 = vector.load %arg3[%c0_3, %c0_4] : memref<1x64xf32, #tpu.memory_space<vmem>>, vector<1x64xf32>
    %4 = vector.broadcast %3 : vector<1x64xf32> to vector<8x64xf32>
    %5 = arith.addf %2, %4 : vector<8x64xf32>
    %6 = math.tanh %5 : vector<8x64xf32>
    %c0_5 = arith.constant 0 : index
    %c0_6 = arith.constant 0 : index
    %7 = vector.load %arg4[%c0_5, %c0_6] : memref<64x64xf32, #tpu.memory_space<vmem>>, vector<64x64xf32>
    %cst_7 = arith.constant dense<0.000000e+00> : vector<8x64xf32>
    %8 = tpu.matmul %6, %7, %cst_7 {dimension_numbers = #tpu.dot_dimension_numbers<[1], [0], [0], [1], [0, 0, 1, 1], [], []>} : vector<8x64xf32>, vector<64x64xf32>, vector<8x64xf32> -> vector<8x64xf32>
    %c0_8 = arith.constant 0 : index
    %c0_9 = arith.constant 0 : index
    %9 = vector.load %arg5[%c0_8, %c0_9] : memref<1x64xf32, #tpu.memory_space<vmem>>, vector<1x64xf32>
    %10 = vector.broadcast %9 : vector<1x64xf32> to vector<8x64xf32>
    %11 = arith.addf %8, %10 : vector<8x64xf32>
    %12 = math.tanh %11 : vector<8x64xf32>
    %c0_10 = arith.constant 0 : index
    %c0_11 = arith.constant 0 : index
    %13 = vector.load %arg6[%c0_10, %c0_11] : memref<64x34xf32, #tpu.memory_space<vmem>>, vector<64x34xf32>
    %cst_12 = arith.constant dense<0.000000e+00> : vector<8x34xf32>
    %14 = tpu.matmul %12, %13, %cst_12 {dimension_numbers = #tpu.dot_dimension_numbers<[1], [0], [0], [1], [0, 0, 1, 1], [], []>} : vector<8x64xf32>, vector<64x34xf32>, vector<8x34xf32> -> vector<8x34xf32>
    %c0_13 = arith.constant 0 : index
    %c0_14 = arith.constant 0 : index
    %15 = vector.load %arg7[%c0_13, %c0_14] : memref<1x34xf32, #tpu.memory_space<vmem>>, vector<1x34xf32>
    %16 = vector.broadcast %15 : vector<1x34xf32> to vector<8x34xf32>
    %17 = arith.addf %14, %16 : vector<8x34xf32>
    %c0_15 = arith.constant 0 : index
    %c0_16 = arith.constant 0 : index
    %18 = vector.load %arg8[%c0_15, %c0_16] : memref<8x34xf32, #tpu.memory_space<vmem>>, vector<8x34xf32>
    tpu.vector_store %arg8[%c0_15, %c0_16], %17 {strides = array<i32>} : memref<8x34xf32, #tpu.memory_space<vmem>>, vector<8x34xf32>,
    return
  }
  func.func @transform_0(%arg0: i32) -> (i32, i32) {
    %c0_i32 = arith.constant 0 : i32
    %c0_i32_0 = arith.constant 0 : i32
    return %arg0, %c0_i32 : i32, i32
  }
  func.func @transform_1(%arg0: i32) -> (i32, i32) {
    %c0_i32 = arith.constant 0 : i32
    %c0_i32_0 = arith.constant 0 : i32
    %c0_i32_1 = arith.constant 0 : i32
    return %c0_i32, %c0_i32_0 : i32, i32
  }
  func.func @transform_2(%arg0: i32) -> (i32, i32) {
    %c0_i32 = arith.constant 0 : i32
    %c0_i32_0 = arith.constant 0 : i32
    %c0_i32_1 = arith.constant 0 : i32
    return %c0_i32, %c0_i32_0 : i32, i32
  }
  func.func @transform_3(%arg0: i32) -> (i32, i32) {
    %c0_i32 = arith.constant 0 : i32
    %c0_i32_0 = arith.constant 0 : i32
    %c0_i32_1 = arith.constant 0 : i32
    return %c0_i32, %c0_i32_0 : i32, i32
  }
  func.func @transform_4(%arg0: i32) -> (i32, i32) {
    %c0_i32 = arith.constant 0 : i32
    %c0_i32_0 = arith.constant 0 : i32
    %c0_i32_1 = arith.constant 0 : i32
    return %c0_i32, %c0_i32_0 : i32, i32
  }
  func.func @transform_5(%arg0: i32) -> (i32, i32) {
    %c0_i32 = arith.constant 0 : i32
    %c0_i32_0 = arith.constant 0 : i32
    %c0_i32_1 = arith.constant 0 : i32
    return %c0_i32, %c0_i32_0 : i32, i32
  }
  func.func @transform_6(%arg0: i32) -> (i32, i32) {
    %c0_i32 = arith.constant 0 : i32
    %c0_i32_0 = arith.constant 0 : i32
    %c0_i32_1 = arith.constant 0 : i32
    return %c0_i32, %c0_i32_0 : i32, i32
  }
  func.func @transform_7(%arg0: i32) -> (i32, i32) {
    %c0_i32 = arith.constant 0 : i32
    %c0_i32_0 = arith.constant 0 : i32
    return %arg0, %c0_i32 : i32, i32
  }
}

</mosaic_0001>

<bundles_post_ra>
// kernel: tpu_custom_call.1
= control target key start
LH: loop header
LB: loop body
LE: loop exit
PB: predicated region body
PF: predicated region fallthrough
CT: control target
= control target key end

     0   :  { %v446_v2 = vmov 0.0|0.0   ;;  %vm447_vm0 = vmmov 0   ;;  %v448_v6 = vmov 0.0   ;;  %s585_s0 = inlined_call_operand.vmem [shape: f32[8,23], index: 0, kind: input, shape index: {}]   ;;  %s586_s1 = inlined_call_operand.vmem [shape: f32[23,64], index: 1, kind: input, shape index: {}]   ;;  %s587_s2 = inlined_call_operand.vmem [shape: f32[1,64], index: 2, kind: input, shape index: {}]   ;;  %s588_s3 = inlined_call_operand.vmem [shape: f32[64,64], index: 3, kind: input, shape index: {}]   ;;  %s589_s4 = inlined_call_operand.vmem [shape: f32[1,64], index: 4, kind: input, shape index: {}]   ;;  %s590_s5 = inlined_call_operand.vmem [shape: f32[64,34], index: 5, kind: input, shape index: {}]   ;;  %s591_s6 = inlined_call_operand.vmem [shape: f32[1,34], index: 6, kind: input, shape index: {}]   ;;  %s592_s7 = inlined_call_operand.hbm [shape: f32[8,34], index: 7, kind: output, shape index: {}]  }
   0x1   :  { %v28_v0 = vld [vmem:[%s586_s1] sm:$0xff]  ;;  %v29_v1 = vld [vmem:[%s586_s1 + $0x8] sm:$0xff]  ;;  %387 = vmatprep.subr.bf16.mxu0 %v446_v2  ;;  %390 = vmatprep.subr.bf16.mxu1 %v446_v2 }
   0x2   :  { %v388_v3 = vpack.c.bf16 %v29_v1, %v28_v0  ;;  %v117_v4 = vld [vmem:[%s588_s3] sm:$0xff]  ;;  %v118_v5 = vld [vmem:[%s588_s3 + $0x8] sm:$0xff]  ;;  %346 = vmatprep.mubr.msk.f32.mxu0 %vm447_vm0, %v448_v6  ;;  %365 = vmatprep.mubr.msk.f32.mxu1 %vm447_vm0, %v448_v6 }
   0x3   :  { %v391_v7 = vpack.c.bf16 %v118_v5, %v117_v4 }
   0x4   :  { %12 = vsyncpa [#allocation3], 0  ;;  %389 = vmatpush3.bf16.msra.mxu0 %v388_v3  ;;  %v30_v8 = vld [vmem:[%s586_s1 + $0x10] sm:$0x7f]  ;;  %vm42_vm1 = vcmask 1046528   ;;  %v27_v9 = vld [vmem:[%s585_s0] sm:$0xff] }
   0x5   :  { %344 = vmatprep.subr.mxu0 %v448_v6  ;;  %392 = vmatpush3.bf16.msra.mxu1 %v391_v7  ;;  %vm38_vm2 = vcmask 187392   ;;  %v119_v10 = vld [vmem:[%s588_s3 + $0x10] sm:$0xff]  ;;  %v120_v11 = vld [vmem:[%s588_s3 + $0x18] sm:$0xff]  ;;  %v121_v13 = vld [vmem:[%s588_s3 + $0x20] sm:$0xff]  ;;  %vm132_vm3 = vcmask 523264   ;;  %vm295_vm4 = vcmask 277504  }
   0x6   :  { %393 = vmatprep.subr.bf16.mxu1 %v446_v2  ;;  %v394_v12 = vpack.c.bf16 %v120_v11, %v119_v10  ;;  %v122_v14 = vld [vmem:[%s588_s3 + $0x28] sm:$0xff]  ;;  %v123_v16 = vld [vmem:[%s588_s3 + $0x30] sm:$0xff]  ;;  %v124_v17 = vld [vmem:[%s588_s3 + $0x38] sm:$0xff] }
   0x7   :  { %v397_v15 = vpack.c.bf16 %v122_v14, %v121_v13  ;;  %v400_v18 = vpack.c.bf16 %v124_v17, %v123_v16  ;;  %v207_v19 = vld [vmem:[%s590_s5] sm:$0xff]  ;;  %v208_v20 = vld [vmem:[%s590_s5 + $0x8] sm:$0xff]  ;;  %v209_v27 = vld [vmem:[%s590_s5 + $0x10] sm:$0xff] }
   0x8   :  { %345 = vmatpush3.msk.msra.mxu0 %vm42_vm1, %v30_v8  ;;  %v403_v21 = vpack.c.bf16 %v208_v20, %v207_v19  ;;  %v311_v22 = vld [vmem:[%s587_s2] ss:$0 sm:$0xff]  ;;  %v210_v28 = vld [vmem:[%s590_s5 + $0x18] sm:$0xff]  ;;  %v212_v31 = vld [vmem:[%s590_s5 + $0x28] sm:$0xff] }
   0x9   :  { %347 = vmatmul.mubr.msk.f32.vlgmr.msra.gmra.mrb[0].mxu0 %vm38_vm2, %v27_v9  ;;  %402 = vmatprep.subr.bf16.mxu0 %v446_v2  ;;  %v406_v29 = vpack.c.bf16 %v210_v28, %v209_v27  ;;  %v211_v30 = vld [vmem:[%s590_s5 + $0x20] sm:$0xff]  ;;  %v213_v33 = vld [vmem:[%s590_s5 + $0x30] sm:$0xff]  ;;  %v214_v34 = vld [vmem:[%s590_s5 + $0x38] sm:$0xff]  ;;  %s449_s5 = smov [#allocation2]  }
   0xa   :  { %384 = vmatprep.mubr.msk.f32.mxu0 %vm447_vm0, %v448_v6  ;;  %395 = vmatpush3.bf16.msra.mxu1 %v394_v12  ;;  %v409_v32 = vpack.c.bf16 %v212_v31, %v211_v30  ;;  %v412_v35 = vpack.c.bf16 %v214_v34, %v213_v33  ;;  %v314_v36 = vld [vmem:[%s589_s4] ss:$0 sm:$0xff]  ;;  %s303_s18 = sshll.u32 %s449_s5, 4  ;;  %s304_s18 = int_to_ptr.vmem [resolvable:$true] %s303_s18 }
   0xb   :  { %396 = vmatprep.subr.bf16.mxu1 %v446_v2  ;;  %404 = vmatpush3.bf16.msra.mxu0 %v403_v21  ;;  %v316_v41 = vld [vmem:[%s591_s6] ss:$0 sm:$0xff]  ;;  %s422_s4 = scalar_lea.vmem %s304_s18, 128  ;;  %p427_p1 = scmp.lt.s32.totalorder %s304_s18, %s304_s18 }
   0xc   :  { %405 = vmatprep.subr.bf16.mxu0 %v446_v2  ;;  %p423_p0 = scmp.ne.s32.totalorder %s304_s18, %s422_s4  ;;  %p428_p2 = scmp.lt.s32.totalorder %s422_s4, %s422_s4 }
   0xe   :  { %398 = vmatpush3.bf16.msra.mxu1 %v397_v15  ;;  %p429_p3 = por %p428_p2, %p427_p1 }
   0xf   :  { %399 = vmatprep.subr.bf16.mxu1 %v446_v2  ;;  %407 = vmatpush3.bf16.msra.mxu0 %v406_v29 }
  0x10   :  { %408 = vmatprep.subr.bf16.mxu0 %v446_v2  ;;  %p430_p4 = pnand %p429_p3, %p423_p0 }
  0x12   :  { %401 = vmatpush3.bf16.msra.mxu1 %v400_v18 }
  0x13   :  { %410 = vmatpush3.bf16.msra.mxu0 %v409_v32 }
  0x14   :  { %411 = vmatprep.subr.bf16.mxu0 %v446_v2 }
  0x17   :  { %413 = vmatpush3.bf16.msra.mxu0 %v412_v35 }
  0xdc   :  { %v112_v23 = vpop.f32.mrb[0].mxu0 }
  0xdd   :  { %v113_v24 = vadd.f32 %v311_v22, %v112_v23  ;;  %v348_v25 = vpop.f32.mrb[1].mxu0 }
  0xdf   :  { %418 = vtanh.f32 %v113_v24 }
  0xe9   :  { %v419_v26 = vpop.eup %418 }
  0xea   :  { %366 = vmatmul.mubr.msk.f32.vlgmr.msra.gmra.mrb[0].mxu1 %vm132_vm3, %v419_v26 }
 0x1bd   :  { %v202_v37 = vpop.f32.mrb[0].mxu1 }
 0x1be   :  { %v203_v38 = vadd.f32 %v314_v36, %v202_v37  ;;  %v367_v39 = vpop.f32.mrb[1].mxu1 }
 0x1c0   :  { %420 = vtanh.f32 %v203_v38 }
 0x1ca   :  { %v421_v40 = vpop.eup %420 }
 0x1cb   :  { %385 = vmatmul.mubr.msk.f32.vlgmr.msra.gmra.mrb[2].mxu0 %vm132_vm3, %v421_v40 }
 0x29e   :  { %v291_v42 = vpop.f32.mrb[2].mxu0 }
 0x29f   :  { %v292_v43 = vadd.f32 %v316_v41, %v291_v42  ;;  %v386_v44 = vpop.f32.mrb[3].mxu0 }
 0x2a1   :  { %296 = vst.msk [vmem:[#allocation2] sm:$0xff] %vm295_vm4, %v292_v43 }
 0x2a2   :  { %433 = shalt.err (!%p430_p4)
}
 0x2a3   :  { %s434_s21 = scalar_lea.hbm %s592_s7, 128 }
 0x2a4   :  { %p435_p5 = scmp.ne.s32.totalorder %s592_s7, %s434_s21  ;;  %p438_p6 = scmp.lt.u32.totalorder %s434_s21, %s592_s7 }
 0x2a6   :  { %p440_p7 = pnand %p438_p6, %p435_p5 }
 0x2a8   :  { %443 = shalt.err (!%p440_p7)
}
 0x2a9   :  { %306 = dma.vmem_to_hbm [thread:$0]  %s304_s18, 128, %s592_s7, [#allocation3]  }
 0x2aa   :  { %444 = dma.done.wait [#allocation3], 128  }
 0x2ab   :  { %445 = vsyncadd [#allocation3], 4294967168 }
 0x2ac   :  { %310 = vsyncpa [#allocation3], 1 }

</bundles_post_ra>
